<compile_context>
chip_gen: v6e
topology: v6e:2x2x1
jax: 0.10.0
libtpu: 0.0.40
codegen_flags: <defaults>
</compile_context>

<pallas_src>
import jax
import jax.numpy as jnp
from jax.experimental import pallas as pl
from jax.experimental.pallas import tpu as pltpu  # noqa: F401  (TPU backend assumed)

# ---------------- problem sizes (small, consistent with the module) ----------------
B = 2          # batch
C = 4          # input channels
H = W = 16     # spatial
COUT = 8       # model output channels (segmentation classes)
T = 6          # number of TTA transforms
HW = H * W
K = 9 * C + 1  # 36 conv taps + 1 bias row = 37 (MXU contraction dim)
N = B * HW     # 512 = 4 * 128 lanes (lane-dense output)


# ---------------------------- Pallas kernel ----------------------------
def tta_conv_kernel(col_ref, w_ref, o_ref):
    """Single fused TTA conv as one MXU matmul.

    col_ref: (K, N)    im2col of the un-augmented batch (+ ones row folding the bias)
    w_ref:   (COUT, K) TTA-folded conv weights, bias in the last column
    o_ref:   (COUT, N) output (batch*spatial flattened, lane-dense)
    """
    o_ref[...] = jnp.dot(w_ref[...], col_ref[...],
                         preferred_element_type=jnp.float32)


def tta_conv_pallas(col, w_mat):
    """col: (K, N) f32, w_mat: (COUT, K) f32 -> (COUT, N) f32. Single grid step."""
    return pl.pallas_call(
        tta_conv_kernel,
        out_shape=jax.ShapeDtypeStruct((COUT, N), jnp.float32),
        grid=(1,),
        in_specs=[
            pl.BlockSpec((K, N), lambda i: (0, 0)),
            pl.BlockSpec((COUT, K), lambda i: (0, 0)),
        ],
        out_specs=pl.BlockSpec((COUT, N), lambda i: (0, 0)),
    )(col, w_mat)


# ------------------- TTA transforms (match torch rot90/flip exactly) -------------------
# (apply_aug_image, apply_deaug_mask) pairs for
# [Rotate_0, Rotate_90, Rotate_180, Rotate_270, HorizontalFlip, VerticalFlip].
TRANSFORMS = [
    (lambda x: x,                        lambda x: x),                        # Rotate_0
    (lambda x: jnp.rot90(x, 3, (2, 3)),  lambda x: jnp.rot90(x, 1, (2, 3))),  # Rotate_90
    (lambda x: jnp.rot90(x, 2, (2, 3)),  lambda x: jnp.rot90(x, 2, (2, 3))),  # Rotate_180
    (lambda x: jnp.rot90(x, 1, (2, 3)),  lambda x: jnp.rot90(x, 3, (2, 3))),  # Rotate_270
    (lambda x: jnp.flip(x, 3),           lambda x: jnp.flip(x, 3)),           # HorizontalFlip
    (lambda x: jnp.flip(x, 2),           lambda x: jnp.flip(x, 2)),           # VerticalFlip
]


def fold_tta_weights(w):
    """mean_t deaug_t(w): exact because deaug_t(conv_w(aug_t(x))) == conv_{deaug_t(w)}(x)
    for a square input, symmetric zero padding, and these rot90/flip symmetries."""
    return sum(de(w) for _, de in TRANSFORMS) / float(len(TRANSFORMS))


# ---------------------------- forward (PseudoAug, merge_mode='mean') ----------------------------
@jax.jit
def pseudo_aug_forward(image, w, bias):
    """image: (B, C, H, W), w: (COUT, C, 3, 3), bias: (COUT,) -> (B, COUT, H, W)"""
    # 1) Fold the 6 TTA transforms + mean merge into the conv weights (linearity).
    w_eff = fold_tta_weights(w)                                   # (COUT, C, 3, 3)
    w_mat = jnp.concatenate(
        [w_eff.reshape(COUT, C * 9), bias.reshape(COUT, 1)], axis=1)  # (COUT, K=37)
    # 2) im2col of the un-augmented batch (XLA fuses the pad/slice/stack cheaply).
    x_pad = jnp.pad(image, ((0, 0), (0, 0), (1, 1), (1, 1)))      # (B, C, H+2, W+2)
    taps = [x_pad[:, :, ky:ky + H, kx:kx + W]
            for ky in range(3) for kx in range(3)]                # 9 x (B, C, H, W)
    col = jnp.stack(taps, axis=2).reshape(B, C * 9, HW)           # row = c*9 + (ky*3+kx)
    col = jnp.transpose(col, (1, 0, 2)).reshape(C * 9, N)         # (36, B*HW)
    col = jnp.concatenate(
        [col, jnp.ones((1, N), jnp.float32)], axis=0)             # (K=37, N) bias row
    # 3) One Pallas matmul = the whole TTA ensemble.
    out = tta_conv_pallas(col, w_mat)                             # (COUT, B*HW)
    return jnp.transpose(out.reshape(COUT, B, H, W), (1, 0, 2, 3))


# ------------------ pure-JAX reference (mirrors the PyTorch PseudoAug loop) ------------------
def _model_ref(x, w, bias):
    out = jax.lax.conv_general_dilated(
        x, w, window_strides=(1, 1), padding=((1, 1), (1, 1)),
        dimension_numbers=("NCHW", "OIHW", "NCHW"))
    return out + bias[None, :, None, None]


def pseudo_aug_ref(image, w, bias):
    results = []
    for b in range(image.shape[0]):
        img = image[b:b + 1]
        acc = None
        for aug, de in TRANSFORMS:
            out = de(_model_ref(aug(img), w, bias))
            acc = out if acc is None else acc + out
        results.append(acc / len(TRANSFORMS))
    return jnp.concatenate(results, axis=0)


if __name__ == "__main__":
    key = jax.random.PRNGKey(0)
    k_img, k_w, k_b = jax.random.split(key, 3)
    image = jax.random.normal(k_img, (B, C, H, W), dtype=jnp.float32)
    w = jax.random.normal(k_w, (COUT, C, 3, 3), dtype=jnp.float32) * 0.1
    bias = jax.random.normal(k_b, (COUT,), dtype=jnp.float32) * 0.1

    out = jax.block_until_ready(pseudo_aug_forward(image, w, bias))
    ref = pseudo_aug_ref(image, w, bias)

    assert out.shape == (B, COUT, H, W)
    assert jnp.allclose(out, ref, atol=1e-4, rtol=1e-4), "mismatch vs pure-JAX PseudoAug reference"

    print("KERNEL_OK")
</pallas_src>

<mosaic_0001>
module attributes {stable_mosaic.version = 11 : i64} {
  func.func @tta_conv_kernel(%arg0: i32, %arg1: memref<37x512xf32, #tpu.memory_space<vmem>>, %arg2: memref<8x37xf32, #tpu.memory_space<vmem>>, %arg3: memref<8x512xf32, #tpu.memory_space<vmem>>) attributes {dimension_semantics = [#tpu.dimension_semantics<arbitrary>], iteration_bounds = array<i64: 1>, scalar_prefetch = 0 : i64, scratch_operands = 0 : i64, tpu.core_type = #tpu.core_type<tc>, window_params = [{pipeline_mode = #tpu.pipeline_mode<synchronous>, transform_indices = @transform_0, window_bounds = array<i64: 37, 512>}, {pipeline_mode = #tpu.pipeline_mode<synchronous>, transform_indices = @transform_1, window_bounds = array<i64: 8, 37>}, {pipeline_mode = #tpu.pipeline_mode<synchronous>, transform_indices = @transform_2, window_bounds = array<i64: 8, 512>}]} {
    %c0 = arith.constant 0 : index
    %c0_0 = arith.constant 0 : index
    %0 = vector.load %arg2[%c0, %c0_0] : memref<8x37xf32, #tpu.memory_space<vmem>>, vector<8x37xf32>
    %c0_1 = arith.constant 0 : index
    %c0_2 = arith.constant 0 : index
    %1 = vector.load %arg1[%c0_1, %c0_2] : memref<37x512xf32, #tpu.memory_space<vmem>>, vector<37x512xf32>
    %cst = arith.constant dense<0.000000e+00> : vector<8x512xf32>
    %2 = tpu.matmul %0, %1, %cst {dimension_numbers = #tpu.dot_dimension_numbers<[1], [0], [0], [1], [0, 0, 1, 1], [], []>} : vector<8x37xf32>, vector<37x512xf32>, vector<8x512xf32> -> vector<8x512xf32>
    %c0_3 = arith.constant 0 : index
    %c0_4 = arith.constant 0 : index
    %3 = vector.load %arg3[%c0_3, %c0_4] : memref<8x512xf32, #tpu.memory_space<vmem>>, vector<8x512xf32>
    tpu.vector_store %arg3[%c0_3, %c0_4], %2 {strides = array<i32>} : memref<8x512xf32, #tpu.memory_space<vmem>>, vector<8x512xf32>,
    return
  }
  func.func @transform_0(%arg0: i32) -> (i32, i32) {
    %c0_i32 = arith.constant 0 : i32
    %c0_i32_0 = arith.constant 0 : i32
    %c0_i32_1 = arith.constant 0 : i32
    return %c0_i32, %c0_i32_0 : i32, i32
  }
  func.func @transform_1(%arg0: i32) -> (i32, i32) {
    %c0_i32 = arith.constant 0 : i32
    %c0_i32_0 = arith.constant 0 : i32
    %c0_i32_1 = arith.constant 0 : i32
    return %c0_i32, %c0_i32_0 : i32, i32
  }
  func.func @transform_2(%arg0: i32) -> (i32, i32) {
    %c0_i32 = arith.constant 0 : i32
    %c0_i32_0 = arith.constant 0 : i32
    %c0_i32_1 = arith.constant 0 : i32
    return %c0_i32, %c0_i32_0 : i32, i32
  }
}

</mosaic_0001>

<bundles_post_ra>
// kernel: pseudo_aug_forward.1
= control target key start
LH: loop header
LB: loop body
LE: loop exit
PB: predicated region body
PF: predicated region fallthrough
CT: control target
= control target key end

     0   :  { %vm36_vm0 = vcmask 1044480   ;;  %v206_v3 = vmov 0.0   ;;  %vm32_vm1 = vcmask 302080   ;;  %s297_s0 = inlined_call_operand.vmem [shape: f32[37,512], index: 0, kind: input, shape index: {}]   ;;  %s298_s1 = inlined_call_operand.vmem [shape: f32[8,37], index: 1, kind: input, shape index: {}]   ;;  %s299_s2 = inlined_call_operand.vmem [shape: f32[8,512], index: 2, kind: output, shape index: {}]  }
   0x1   :  { %v29_v0 = vld [vmem:[%s297_s0 + $0x88] sm:$0x1f]  ;;  %v31_v1 = vld [vmem:[%s297_s0 + $0x98] sm:$0x1f]  ;;  %v28_v2 = vld [vmem:[%s297_s0 + $0x80] sm:$0x1f]  ;;  %113 = vmatprep.mubr.f32.mxu0 %v206_v3  ;;  %184 = vmatprep.mubr.f32.mxu1 %v206_v3 }
   0x2   :  { %199 = vmatprep.subr.msk.mxu0 %vm36_vm0, %v29_v0  ;;  %202 = vmatprep.subr.msk.mxu1 %vm36_vm0, %v31_v1  ;;  %v30_v4 = vld [vmem:[%s297_s0 + $0x90] sm:$0x1f]  ;;  %v25_v5 = vld [vmem:[%s297_s0 + $0x68] sm:$0xff]  ;;  %v27_v6 = vld [vmem:[%s297_s0 + $0x78] sm:$0xff] }
   0x3   :  { %200 = vmatpush1.msk.msra.mxu0 %vm36_vm0, %v28_v2  ;;  %203 = vmatpush1.msk.msra.mxu1 %vm36_vm0, %v30_v4  ;;  %v24_v7 = vld [vmem:[%s297_s0 + $0x60] sm:$0xff]  ;;  %v26_v8 = vld [vmem:[%s297_s0 + $0x70] sm:$0xff]  ;;  %v21_v9 = vld [vmem:[%s297_s0 + $0x48] sm:$0xff] }
   0x4   :  { %73 = vmatprep.subr.mxu0 %v25_v5  ;;  %144 = vmatprep.subr.mxu1 %v27_v6  ;;  %v23_v10 = vld [vmem:[%s297_s0 + $0x58] sm:$0xff]  ;;  %v20_v11 = vld [vmem:[%s297_s0 + $0x40] sm:$0xff]  ;;  %v22_v12 = vld [vmem:[%s297_s0 + $0x50] sm:$0xff] }
   0x5   :  { %74 = vmatpush1.msra.mxu0 %v24_v7  ;;  %145 = vmatpush1.msra.mxu1 %v26_v8  ;;  %v17_v13 = vld [vmem:[%s297_s0 + $0x28] sm:$0xff]  ;;  %v19_v14 = vld [vmem:[%s297_s0 + $0x38] sm:$0xff]  ;;  %v16_v15 = vld [vmem:[%s297_s0 + $0x20] sm:$0xff] }
   0x6   :  { %75 = vmatprep.subr.mxu0 %v21_v9  ;;  %146 = vmatprep.subr.mxu1 %v23_v10  ;;  %v18_v16 = vld [vmem:[%s297_s0 + $0x30] sm:$0xff]  ;;  %v13_v17 = vld [vmem:[%s297_s0 + $0x8] sm:$0xff]  ;;  %v15_v18 = vld [vmem:[%s297_s0 + $0x18] sm:$0xff] }
   0x7   :  { %76 = vmatpush1.msra.mxu0 %v20_v11  ;;  %147 = vmatpush1.msra.mxu1 %v22_v12  ;;  %v12_v19 = vld [vmem:[%s297_s0] sm:$0xff]  ;;  %v14_v20 = vld [vmem:[%s297_s0 + $0x10] sm:$0xff] }
   0x8   :  { %77 = vmatprep.subr.mxu0 %v17_v13  ;;  %148 = vmatprep.subr.mxu1 %v19_v14  ;;  %v11_v21 = vld [vmem:[%s298_s1] sm:$0xff] }
   0x9   :  { %78 = vmatpush1.msra.mxu0 %v16_v15  ;;  %149 = vmatpush1.msra.mxu1 %v18_v16 }
   0xa   :  { %79 = vmatprep.subr.mxu0 %v13_v17  ;;  %150 = vmatprep.subr.mxu1 %v15_v18 }
   0xb   :  { %80 = vmatpush1.msra.mxu0 %v12_v19  ;;  %151 = vmatpush1.msra.mxu1 %v14_v20 }
   0xc   :  { %201 = vmatmul.mubr.msk.f32.vlgmr.msra.gmra.mxu0 %vm32_vm1, %v11_v21  ;;  %204 = vmatmul.mubr.msk.f32.vlgmr.msra.gmra.mxu1 %vm32_vm1, %v11_v21 }
  0xcc   :  { %v115_v22 = vpop.f32.mrf.mxu0  ;;  %v186_v23 = vpop.f32.mrf.mxu1 }
  0xcd   :  { %191 = vst [vmem:[%s299_s2] sm:$0xff] %v115_v22  ;;  %193 = vst [vmem:[%s299_s2 + $0x10] sm:$0xff] %v186_v23 }
  0xce   :  { %v117_v24 = vpop.f32.mrf.mxu0  ;;  %v188_v25 = vpop.f32.mrf.mxu1 }
  0xcf   :  { %192 = vst [vmem:[%s299_s2 + $0x8] sm:$0xff] %v117_v24  ;;  %194 = vst [vmem:[%s299_s2 + $0x18] sm:$0xff] %v188_v25 }

</bundles_post_ra>
